<compile_context>
chip_gen: v7x
topology: tpu7x:2x2x1
jax: 0.10.0
libtpu: 0.0.40
codegen_flags: <defaults>
</compile_context>

<pallas_src>
import jax
import jax.numpy as jnp
from jax.experimental import pallas as pl
from jax.experimental.pallas import tpu as pltpu

EPS = 1e-5  # nn.LayerNorm default


def _round_up(a, b):
    return (a + b - 1) // b * b


def _vmem_capacity_bytes():
    try:
        return int(pltpu.get_tpu_info().vmem_capacity_bytes)
    except Exception:
        return 64 << 20  # conservative fallback: v7x per-TC VMEM


def prenorm_linear_kernel(x_ref, gamma_ref, beta_ref, w_ref, bias_ref,
                          o_ref, y_ref):
    # x_ref: (tm, D) storage dtype | gamma/beta: (1, D) f32
    # w_ref: (D, tn) bf16 | bias_ref: (1, tn) f32 | o_ref: (tm, tn)
    # y_ref: (tm, D) bf16 scratch holding the normalized rows (persists
    #        across the sequential j axis for a fixed row tile i).

    @pl.when(pl.program_id(1) == 0)
    def _():
        # LayerNorm once per row tile, f32 statistics over the lane axis.
        # Biased variance + eps=1e-5 matches torch.nn.LayerNorm exactly.
        x = x_ref[...].astype(jnp.float32)
        mean = jnp.mean(x, axis=-1, keepdims=True)
        centered = x - mean
        var = jnp.mean(centered * centered, axis=-1, keepdims=True)
        y = centered * jax.lax.rsqrt(var + EPS) * gamma_ref[...] + beta_ref[...]
        y_ref[...] = y.astype(y_ref.dtype)

    # fn = Linear(dim, hidden): bf16 operands into the MXU, f32 accumulation.
    out = jnp.dot(y_ref[...], w_ref[...], preferred_element_type=jnp.float32)
    o_ref[...] = (out + bias_ref[...]).astype(o_ref.dtype)


def prenorm_linear(x, gamma, beta, w, bias, *, tm=512, tn=512,
                   matmul_dtype=jnp.bfloat16, x_hbm_dtype=jnp.bfloat16,
                   out_dtype=None):
    """PreNorm with fn=Linear:  x: (B, S, D) -> (B, S, H), H = w.shape[1]."""
    B, S, D = x.shape
    H = w.shape[1]
    M = B * S
    out_dtype = x.dtype if out_dtype is None else out_dtype
    x_hbm_dtype = x.dtype if x_hbm_dtype is None else x_hbm_dtype

    # ---- feature tiling: lane-dense (multiple of 128), pad H if needed ----
    Hp = _round_up(H, 128)
    tn = max(128, (min(tn, Hp) // 128) * 128)
    while Hp % tn != 0:
        tn -= 128

    # ---- row tiling: multiple of 8 sublanes; >=2 programs on the parallel
    # ---- axis when M allows (keeps both v7x TensorCores busy) ----
    tm = max(8, min(tm, _round_up(M, 8)))
    if M >= 16:
        tm = min(tm, _round_up((M + 1) // 2, 8))

    # ---- shrink tiles against the chip's VMEM capacity ----
    x_isz = jnp.dtype(x_hbm_dtype).itemsize
    w_isz = jnp.dtype(matmul_dtype).itemsize
    o_isz = jnp.dtype(out_dtype).itemsize
    vmem_cap = _vmem_capacity_bytes()
    budget = int(vmem_cap * 0.7)

    def _usage(tm_, tn_):
        return (2 * tm_ * D * x_isz          # x block, double-buffered
                + tm_ * D * 2                # bf16 normalized-row scratch
                + 3 * tm_ * D * 4            # f32 LN temporaries (headroom)
                + 2 * D * tn_ * w_isz        # weight block, double-buffered
                + 2 * tm_ * tn_ * o_isz      # output block, double-buffered
                + 2 * tm_ * tn_ * 4          # f32 matmul result headroom
                + 2 * tn_ * 4 + 2 * D * 4)   # bias / gamma / beta

    while tm > 8 and _usage(tm, tn) > budget:
        tm = max(8, _round_up(tm // 2, 8))
    while tn > 128 and _usage(tm, tn) > budget:
        tn = max(128, (tn // 2 // 128) * 128)
        while Hp % tn != 0:
            tn -= 128

    Mp = _round_up(M, tm)
    grid = (Mp // tm, Hp // tn)
    n_i = grid[0]

    # ---- wrapper-side layout prep (pure plumbing, no compute hoisting) ----
    x2 = x.reshape(M, D).astype(x_hbm_dtype)
    if Mp != M:
        x2 = jnp.pad(x2, ((0, Mp - M), (0, 0)))
    gamma2 = gamma.reshape(1, D).astype(jnp.float32)
    beta2 = beta.reshape(1, D).astype(jnp.float32)
    w2 = w.astype(matmul_dtype)
    bias2 = bias.reshape(1, H).astype(jnp.float32)
    if Hp != H:
        w2 = jnp.pad(w2, ((0, 0), (0, Hp - H)))
        bias2 = jnp.pad(bias2, ((0, 0), (0, Hp - H)))

    cost = pl.CostEstimate(
        flops=2 * Mp * D * Hp + 8 * Mp * D,   # matmul + LN (LN now once/row)
        transcendentals=Mp,                    # one rsqrt per row
        bytes_accessed=(Mp * D * x_isz         # x read once (resident across j)
                        + n_i * D * Hp * w_isz  # weight re-streamed per row tile
                        + n_i * Hp * 4          # bias re-fetched per row tile
                        + 2 * D * 4             # gamma / beta
                        + Mp * Hp * o_isz),     # output writeback
    )

    vmem_limit = max(32 << 20, min(int(vmem_cap * 0.85), 112 << 20))

    out2 = pl.pallas_call(
        prenorm_linear_kernel,
        out_shape=jax.ShapeDtypeStruct((Mp, Hp), out_dtype),
        grid_spec=pltpu.PrefetchScalarGridSpec(
            num_scalar_prefetch=0,
            grid=grid,
            in_specs=[
                pl.BlockSpec((tm, D), lambda i, j: (i, 0)),   # x rows (resident across j)
                pl.BlockSpec((1, D), lambda i, j: (0, 0)),    # gamma (grid-invariant)
                pl.BlockSpec((1, D), lambda i, j: (0, 0)),    # beta  (grid-invariant)
                pl.BlockSpec((D, tn), lambda i, j: (0, j)),   # weight column tile
                pl.BlockSpec((1, tn), lambda i, j: (0, j)),   # bias column tile
            ],
            out_specs=pl.BlockSpec((tm, tn), lambda i, j: (i, j)),
            scratch_shapes=[pltpu.VMEM((tm, D), matmul_dtype)],  # hoisted LN rows
        ),
        compiler_params=pltpu.CompilerParams(
            # j must be sequential ("arbitrary") so the pl.when(j==0) LN init
            # is observed by all j>0 tiles; i stays "parallel" (megacore).
            dimension_semantics=("parallel", "arbitrary"),
            vmem_limit_bytes=vmem_limit,
        ),
        cost_estimate=cost,
    )(x2, gamma2, beta2, w2, bias2)

    return out2[:M, :H].reshape(B, S, H)


if __name__ == "__main__":
    # Small shapes: batch=2, seq=8, dim=32, hidden=64
    B, S, D, H = 2, 8, 32, 64
    key = jax.random.PRNGKey(0)
    kx, kw, kb = jax.random.split(key, 3)

    x = jax.random.normal(kx, (B, S, D), dtype=jnp.float32)

    # Deterministic parameter init (synthetic, matches module shapes):
    # nn.LayerNorm(dim): gamma=ones(D), beta=zeros(D)
    gamma = jnp.ones((D,), dtype=jnp.float32)
    beta = jnp.zeros((D,), dtype=jnp.float32)
    # fn = nn.Linear(dim, hidden): torch weight (H, D) -> stored transposed (D, H)
    w = jax.random.normal(kw, (D, H), dtype=jnp.float32) * 0.02
    bias = jax.random.normal(kb, (H,), dtype=jnp.float32) * 0.02

    out = prenorm_linear(x, gamma, beta, w, bias)
    jax.block_until_ready(out)

    # Reference check in plain JAX (LayerNorm + Linear, full f32).
    mean = jnp.mean(x, axis=-1, keepdims=True)
    var = jnp.mean((x - mean) ** 2, axis=-1, keepdims=True)
    ref = ((x - mean) / jnp.sqrt(var + EPS)) * gamma + beta
    ref = ref @ w + bias
    # bf16 x storage + bf16 MXU operands (f32 accumulate) loosen tolerance
    # vs the f32 reference.
    assert out.shape == (B, S, H)
    assert jnp.allclose(out, ref, atol=1e-2, rtol=1e-2), "mismatch vs reference"

    print("KERNEL_OK")
</pallas_src>

<mosaic_0001>
module attributes {stable_mosaic.version = 11 : i64} {
  func.func @prenorm_linear_kernel(%arg0: i32, %arg1: i32, %arg2: memref<8x32xbf16, #tpu.memory_space<vmem>>, %arg3: memref<1x32xf32, #tpu.memory_space<vmem>>, %arg4: memref<1x32xf32, #tpu.memory_space<vmem>>, %arg5: memref<32x128xbf16, #tpu.memory_space<vmem>>, %arg6: memref<1x128xf32, #tpu.memory_space<vmem>>, %arg7: memref<8x128xf32, #tpu.memory_space<vmem>>, %arg8: memref<8x32xbf16, #tpu.memory_space<vmem>>) attributes {dimension_semantics = [#tpu.dimension_semantics<parallel>, #tpu.dimension_semantics<arbitrary>], iteration_bounds = array<i64: 2, 1>, scalar_prefetch = 0 : i64, scratch_operands = 1 : i64, tpu.core_type = #tpu.core_type<tc>, window_params = [{transform_indices = @transform_0, window_bounds = array<i64: 8, 32>}, {pipeline_mode = #tpu.pipeline_mode<synchronous>, transform_indices = @transform_1, window_bounds = array<i64: 1, 32>}, {pipeline_mode = #tpu.pipeline_mode<synchronous>, transform_indices = @transform_2, window_bounds = array<i64: 1, 32>}, {transform_indices = @transform_3, window_bounds = array<i64: 32, 128>}, {transform_indices = @transform_4, window_bounds = array<i64: 1, 128>}, {transform_indices = @transform_5, window_bounds = array<i64: 8, 128>}]} {
    %c0_i32 = arith.constant 0 : i32
    %0 = arith.cmpi eq, %arg1, %c0_i32 : i32
    %1 = arith.extui %0 : i1 to i32
    %c0_i32_0 = arith.constant 0 : i32
    %2 = arith.cmpi ne, %1, %c0_i32_0 : i32
    scf.if %2 {
      %c0_8 = arith.constant 0 : index
      %c0_9 = arith.constant 0 : index
      %10 = vector.load %arg2[%c0_8, %c0_9] : memref<8x32xbf16, #tpu.memory_space<vmem>>, vector<8x32xbf16>
      %11 = arith.extf %10 : vector<8x32xbf16> to vector<8x32xf32>
      %cst_10 = arith.constant dense<0.000000e+00> : vector<8xf32>
      %12 = vector.multi_reduction <add>, %11, %cst_10 [1] : vector<8x32xf32> to vector<8xf32>
      %13 = vector.shape_cast %12 : vector<8xf32> to vector<8x1xf32>
      %cst_11 = arith.constant 3.200000e+01 : f32
      %14 = vector.broadcast %cst_11 : f32 to vector<8x1xf32>
      %15 = arith.divf %13, %14 : vector<8x1xf32>
      %16 = vector.broadcast %15 : vector<8x1xf32> to vector<8x32xf32>
      %17 = arith.subf %11, %16 : vector<8x32xf32>
      %18 = arith.mulf %17, %17 : vector<8x32xf32>
      %cst_12 = arith.constant dense<0.000000e+00> : vector<8xf32>
      %19 = vector.multi_reduction <add>, %18, %cst_12 [1] : vector<8x32xf32> to vector<8xf32>
      %20 = vector.shape_cast %19 : vector<8xf32> to vector<8x1xf32>
      %cst_13 = arith.constant 3.200000e+01 : f32
      %21 = vector.broadcast %cst_13 : f32 to vector<8x1xf32>
      %22 = arith.divf %20, %21 : vector<8x1xf32>
      %cst_14 = arith.constant 9.99999974E-6 : f32
      %23 = vector.broadcast %cst_14 : f32 to vector<8x1xf32>
      %24 = arith.addf %22, %23 : vector<8x1xf32>
      %25 = math.rsqrt %24 : vector<8x1xf32>
      %26 = vector.broadcast %25 : vector<8x1xf32> to vector<8x32xf32>
      %27 = arith.mulf %17, %26 : vector<8x32xf32>
      %c0_15 = arith.constant 0 : index
      %c0_16 = arith.constant 0 : index
      %28 = vector.load %arg3[%c0_15, %c0_16] : memref<1x32xf32, #tpu.memory_space<vmem>>, vector<1x32xf32>
      %29 = vector.broadcast %28 : vector<1x32xf32> to vector<8x32xf32>
      %30 = arith.mulf %27, %29 : vector<8x32xf32>
      %c0_17 = arith.constant 0 : index
      %c0_18 = arith.constant 0 : index
      %31 = vector.load %arg4[%c0_17, %c0_18] : memref<1x32xf32, #tpu.memory_space<vmem>>, vector<1x32xf32>
      %32 = vector.broadcast %31 : vector<1x32xf32> to vector<8x32xf32>
      %33 = arith.addf %30, %32 : vector<8x32xf32>
      %34 = arith.truncf %33 : vector<8x32xf32> to vector<8x32xbf16>
      %c0_19 = arith.constant 0 : index
      %c0_20 = arith.constant 0 : index
      %35 = vector.load %arg8[%c0_19, %c0_20] : memref<8x32xbf16, #tpu.memory_space<vmem>>, vector<8x32xbf16>
      tpu.vector_store %arg8[%c0_19, %c0_20], %34 {strides = array<i32>} : memref<8x32xbf16, #tpu.memory_space<vmem>>, vector<8x32xbf16>,
    } else {
    }
    %c0 = arith.constant 0 : index
    %c0_1 = arith.constant 0 : index
    %3 = vector.load %arg8[%c0, %c0_1] : memref<8x32xbf16, #tpu.memory_space<vmem>>, vector<8x32xbf16>
    %c0_2 = arith.constant 0 : index
    %c0_3 = arith.constant 0 : index
    %4 = vector.load %arg5[%c0_2, %c0_3] : memref<32x128xbf16, #tpu.memory_space<vmem>>, vector<32x128xbf16>
    %cst = arith.constant dense<0.000000e+00> : vector<8x128xf32>
    %5 = tpu.matmul %3, %4, %cst {dimension_numbers = #tpu.dot_dimension_numbers<[1], [0], [0], [1], [0, 0, 1, 1], [], []>} : vector<8x32xbf16>, vector<32x128xbf16>, vector<8x128xf32> -> vector<8x128xf32>
    %c0_4 = arith.constant 0 : index
    %c0_5 = arith.constant 0 : index
    %6 = vector.load %arg6[%c0_4, %c0_5] : memref<1x128xf32, #tpu.memory_space<vmem>>, vector<1x128xf32>
    %7 = vector.broadcast %6 : vector<1x128xf32> to vector<8x128xf32>
    %8 = arith.addf %5, %7 : vector<8x128xf32>
    %c0_6 = arith.constant 0 : index
    %c0_7 = arith.constant 0 : index
    %9 = vector.load %arg7[%c0_6, %c0_7] : memref<8x128xf32, #tpu.memory_space<vmem>>, vector<8x128xf32>
    tpu.vector_store %arg7[%c0_6, %c0_7], %8 {strides = array<i32>} : memref<8x128xf32, #tpu.memory_space<vmem>>, vector<8x128xf32>,
    return
  }
  func.func @transform_0(%arg0: i32, %arg1: i32) -> (i32, i32) {
    %c0_i32 = arith.constant 0 : i32
    %c0_i32_0 = arith.constant 0 : i32
    return %arg0, %c0_i32 : i32, i32
  }
  func.func @transform_1(%arg0: i32, %arg1: i32) -> (i32, i32) {
    %c0_i32 = arith.constant 0 : i32
    %c0_i32_0 = arith.constant 0 : i32
    %c0_i32_1 = arith.constant 0 : i32
    return %c0_i32, %c0_i32_0 : i32, i32
  }
  func.func @transform_2(%arg0: i32, %arg1: i32) -> (i32, i32) {
    %c0_i32 = arith.constant 0 : i32
    %c0_i32_0 = arith.constant 0 : i32
    %c0_i32_1 = arith.constant 0 : i32
    return %c0_i32, %c0_i32_0 : i32, i32
  }
  func.func @transform_3(%arg0: i32, %arg1: i32) -> (i32, i32) {
    %c0_i32 = arith.constant 0 : i32
    %c0_i32_0 = arith.constant 0 : i32
    return %c0_i32, %arg1 : i32, i32
  }
  func.func @transform_4(%arg0: i32, %arg1: i32) -> (i32, i32) {
    %c0_i32 = arith.constant 0 : i32
    %c0_i32_0 = arith.constant 0 : i32
    return %c0_i32, %arg1 : i32, i32
  }
  func.func @transform_5(%arg0: i32, %arg1: i32) -> (i32, i32) {
    %c0_i32 = arith.constant 0 : i32
    return %arg0, %arg1 : i32, i32
  }
}

</mosaic_0001>

<bundles_post_ra>
// kernel: tpu_custom_call.1
= control target key start
LH: loop header
LB: loop body
LE: loop exit
PB: predicated region body
PF: predicated region fallthrough
CT: control target
= control target key end

     0   :  { %10 = vsyncpa [#allocation4], 0  ;;  %s1042_s0 = inlined_call_operand.hbm [shape: bf16[16,32], index: 0, kind: input, shape index: {}]   ;;  %s1043_s1 = inlined_call_operand.vmem [shape: f32[1,32], index: 1, kind: input, shape index: {}]   ;;  %s1044_s2 = inlined_call_operand.vmem [shape: f32[1,32], index: 2, kind: input, shape index: {}]   ;;  %s1045_s3 = inlined_call_operand.hbm [shape: bf16[32,128], index: 3, kind: input, shape index: {}]   ;;  %s1046_s4 = inlined_call_operand.vmem [shape: f32[1,128], index: 4, kind: input, shape index: {}]   ;;  %s1047_s5 = inlined_call_operand.hbm [shape: f32[16,128], index: 5, kind: output, shape index: {}]  }
   0x1   :  { %12 = vsyncpa [#allocation4 + $0x1], 0 }
   0x2   :  { %13 = vsyncpa [#allocation7], 0 }
   0x3   :  { %14 = vsyncpa [#allocation5], 0 }
   0x4   :  { %16 = vsyncpa [#allocation5 + $0x1], 0  ;;  %s815_s18 = smov 0   ;;  %s817_s19 = smov 0  }
   0x5   :  { %s819_s20 = smov 0   ;;  %s821_s21 = smov 0  }
   0x6   :  { %s823_s22 = smov 0   ;;  %s825_s23 = smov 0  }
   0x7 LB: > { %s518_s24 = sadd.s32 4294967295, %s776_s23   ;;  %s519_s25 = sadd.s32 4294967294, %s776_s23   ;;  %s776_s23 = sphi %s825_s23, %s22_s23   ;;  %s772_s22 = sphi %s823_s22, %s1071_s22   ;;  %s768_s21 = sphi %s821_s21, %s1070_s21   ;;  %s764_s20 = sphi %s819_s20, %s1069_s20   ;;  %s760_s19 = sphi %s817_s19, %s1068_s19   ;;  %s756_s18 = sphi %s815_s18, %s1067_s18  }
   0x8   : > { %p54_p0 = scmp.ne.s32.totalorder %s760_s19, %s756_s18  ;;  %p849_p1 = scmp.eq.s32.totalorder %s518_s24, 0 }
   0x9   : > { %p853_p2 = scmp.eq.s32.totalorder %s518_s24, 1  ;;  %p180_p3 = scmp.eq.s32.totalorder %s519_s25, 1 }
   0xa   : > { %s1052_s26 = scalar_select %p849_p1, 1, 0 }
   0xb   : > { %s1053_s27 = scalar_select %p853_p2, 1, 0 }
   0xc   : > { %p859_p4 = por %p849_p1, %p54_p0  ;;  %p520_p5 = scmp.ge.s32.totalorder %s776_s23, 1 }
   0xd   : > { %p864_p6 = por %p180_p3, %p54_p0  ;;  %p187_p7 = scmp.lt.s32.totalorder %s776_s23, 3 }
   0xe   : > { %s1054_s28 = scalar_select %p859_p4, 1, 0 }
   0xf   : > { %s1055_s29 = scalar_select %p864_p6, 1, 0 }
  0x10   : > { %p869_p8 = pnand %p520_p5, %p187_p7  ;;  %s778_s6 = smov [#allocation6]  }
  0x11   : > { %s207_s7 = sshll.u32 %s778_s6, 4  ;;  %s34_s9 = sadd.s32 1, %s772_s22  ;;  %s208_s7 = int_to_ptr.vmem [resolvable:$true] %s207_s7 }
  0x12   : > { %s1056_s30 = scalar_select %p869_p8, 1, 0 }
  0x13   : > { %p559_p9 = pneg %p869_p8  ;;  %s632_s12 = scalar_lea.hbm %s1045_s3, 256 }
  0x14   : > { %p633_p12 = scmp.ne.s32.totalorder %s1045_s3, %s632_s12  ;;  %p639_p5 = scmp.lt.u32.totalorder %s632_s12, %s1045_s3 }
  0x15   : > { %p878_p11 = pnand %p559_p9, %p849_p1 }
  0x17   : > { %p634_p13 = pneg %p878_p11 }
  0x19   : > { %p635_p0 = pnand %p634_p13, %p633_p12 }
  0x1b   : > { %p636_p3 = pneg %p635_p0 }
  0x1d   : > { %p641_p7 = pnand %p639_p5, %p636_p3 }
  0x1f   : > { %644 = shalt.err (!%p641_p7)
}
  0x20   : > { %s645_s17 = scalar_lea.vmem %s208_s7, 256  ;;  %p653_p1 = scmp.lt.s32.totalorder %s208_s7, %s208_s7 }
  0x21   : > { %p646_p9 = scmp.ne.s32.totalorder %s208_s7, %s645_s17  ;;  %p654_p4 = scmp.lt.s32.totalorder %s645_s17, %s645_s17 }
  0x23   : > { %p648_p10 = pnand %p646_p9, %p634_p13  ;;  %p655_p8 = por %p654_p4, %p653_p1 }
  0x25   : > { %p649_p6 = pneg %p648_p10 }
  0x27   : > { %p656_p2 = pnand %p655_p8, %p649_p6 }
  0x29   : > { %659 = shalt.err (!%p656_p2)
}
  0x2a   : > { %s779_s24 = smov 64   ;;  %s780_s25 = smov 4  }
  0x2b   : > { %562 = dma.hbm_to_vmem [thread:$0]  (!%p878_p11), %s1045_s3, 256, %s208_s7, [#allocation7], %s779_s24, %s779_s24, %s780_s25  }
  0x2c   : > { %p36_p1 = scmp.ge.s32.totalorder %s34_s9, 2  ;;  %s41_s11 = sadd.s32 1, %s764_s20 }
  0x2d   : > { %p48_p2 = scmp.ne.s32.totalorder %s764_s20, %s760_s19  ;;  %p49_p4 = scmp.eq.s32.totalorder %s776_s23, 0 }
  0x2e   : > { %s1073_s9 = smov (%p36_p1, %s34_s9), 0  ;;  %p1059_p8 = scmp.ne.s32.totalorder %s1053_s27, 0 }
  0x2f   : > { %p905_p6 = por %p49_p4, %p48_p2  ;;  %s38_s8 = ssub.s32 %s772_s22, %s1073_s9 }
  0x30   : > { %p911_p10 = por %p1059_p8, %p48_p2  ;;  %p572_p12 = scmp.lt.s32.totalorder %s776_s23, 2 }
  0x31   : > { %p39_p11 = scmp.eq.s32.totalorder %s38_s8, 0  ;;  %s227_s7 = sand.u32 1, %s764_s20  }
  0x32   : > { %s524_s14 = sshll.u32 %s227_s7, 2  ;;  %s525_s16 = sshll.u32 %s772_s22, 6 }
  0x33   : > { %s920_s15 = scalar_select %p39_p11, %s764_s20, %s41_s11  }
  0x34   : > { %s926_s25 = scalar_lea.hbm %s1042_s0, %s525_s16  ;;  %s231_s27 = scalar_lea.vmem [#allocation3], %s524_s14 }
  0x35   : > { %s238_s6 = sshll.u32 %s231_s27, 4  ;;  %p932_p13 = pnand %p572_p12, %p905_p6  ;;  %s928_s6 = int_to_ptr.vmem [resolvable:$true] %s238_s6 }
  0x36   : > { %s228_s11 = scalar_lea.sflag [#allocation4], %s227_s7  ;;  %s660_s8 = scalar_lea.hbm %s926_s25, 64 }
  0x37   : > { %p661_p0 = scmp.ne.s32.totalorder %s926_s25, %s660_s8  ;;  %p662_p3 = pneg %p932_p13 }
  0x38   : > { %s665_s17 = scalar_lea.hbm %s1042_s0, 128  ;;  %p666_p9 = scmp.lt.u32.totalorder %s926_s25, %s1042_s0 }
  0x39   : > { %p663_p5 = pnand %p662_p3, %p661_p0  ;;  %p667_p1 = scmp.lt.u32.totalorder %s665_s17, %s660_s8 }
  0x3a   : > { %p669_p4 = scmp.lt.u32.totalorder %s660_s8, %s926_s25 }
  0x3b   : > { %p664_p7 = pneg %p663_p5  ;;  %p668_p2 = por %p667_p1, %p666_p9 }
  0x3d   : > { %p670_p6 = por %p669_p4, %p668_p2 }
  0x3f   : > { %p671_p8 = pnand %p670_p6, %p664_p7 }
  0x41   : > { %674 = shalt.err (!%p671_p8)
}
  0x42   : > { %s675_s7 = scalar_lea.vmem %s928_s6, 64  ;;  %s781_s27 = smov [#allocation3]  }
  0x43   : > { %p676_p12 = scmp.ne.s32.totalorder %s928_s6, %s675_s7  ;;  %s680_s14 = sshll.u32 %s781_s27, 4  ;;  %s681_s14 = int_to_ptr.vmem [resolvable:$false] %s680_s14 }
  0x44   : > { %s682_s16 = scalar_lea.vmem %s681_s14, 128  ;;  %p683_p5 = scmp.lt.s32.totalorder %s928_s6, %s681_s14 }
  0x45   : > { %p678_p11 = pnand %p676_p12, %p662_p3  ;;  %p684_p9 = scmp.lt.s32.totalorder %s682_s16, %s675_s7 }
  0x47   : > { %p679_p0 = pneg %p678_p11  ;;  %p685_p1 = por %p684_p9, %p683_p5 }
  0x49   : > { %p686_p2 = pnand %p685_p1, %p679_p0 }
  0x4b   : > { %689 = shalt.err (!%p686_p2)
}
  0x4c   : > { %566 = dma.hbm_to_vmem [thread:$0]  (!%p932_p13), %s926_s25, 64, %s928_s6, %s228_s11  }
  0x4d   : > { %p1062_p7 = scmp.ne.s32.totalorder %s1056_s30, 0 }
  0x4e   : > { %s964_s8 = sand.u32 (!%p1062_p7), 1, %s760_s19   ;;  %p1063_p3 = scmp.ne.s32.totalorder (!%p1062_p7), %s1054_s28, 0 }
  0x4f   : > { %247 = sbr.rel (%p1062_p7) target bundleno = 644 (0x284), region = 40  ;;  %s527_s17 = sshll.u32 (!%p1062_p7), %s964_s8, 2 }
  0x50   : > { %s250_s12 = scalar_lea.sflag (!%p1062_p7), [#allocation4], %s964_s8  ;;  %s253_s24 = scalar_lea.vmem (!%p1062_p7), [#allocation3], %s527_s17 }
  0x56   : > { %743 = dma.done.wait (%p1063_p3), %s250_s12, 64  }
  0x57   : > { %745 = vsyncadd (%p1063_p3), %s250_s12, 4294967232  ;;  %p1064_p4 = scmp.ne.s32.totalorder %s1052_s26, 0 }
  0x59   : > { %747 = dma.done.wait (%p1064_p4), [#allocation7], 256  }
  0x5a   : > { %749 = vsyncadd (%p1064_p4), [#allocation7], 4294967040  ;;  %vm297_vm0 = vcmask 261120   ;;  %v295_v0 = vld [vmem:[%s253_s24] sm:$0xf]  ;;  %v628_v8 = vld [vmem:[#allocation6] sm:$0xff]  }
  0x5b   : > { %v296_v1 = vunpack.c.l.bf16 %v295_v0  ;;  %v782_v9 = vmov 0.0   ;;  %v629_v10 = vld [vmem:[#allocation6 + $0x8] sm:$0xff]   ;;  %vm783_vm1 = vmmov 0   ;;  %v530_v15 = vld [vmem:[%s1043_s1] ss:$0 sm:$0xff]  ;;  %vm329_vm2 = vcmask 257024  }
  0x5c   : > { %543 = vmatprep.subr.bf16.mxu0 %v782_v9  ;;  %547 = vmatprep.mubr.msk.bf16.mxu0 %vm783_vm1, %v782_v9  ;;  %v531_v17 = vld [vmem:[%s1044_s2] ss:$0 sm:$0xff]  ;;  %s529_s6 = sshll.u32 %s964_s8, 3  ;;  %s537_s7 = sshll.u32 %s768_s21, 7 }
  0x5d   : > { %v298_v2 = vsel %vm297_vm0, %v296_v1, 0.0  ;;  %544 = vmatpush3.bf16.msra.mxu0 %v628_v8  ;;  %v532_v22 = vld [vmem:[%s1046_s4] ss:$0 sm:$0xff]  ;;  %s286_s27 = scalar_lea.vmem [#allocation8], %s529_s6  ;;  %s993_s12 = scalar_lea.hbm %s1047_s5, %s537_s7 }
  0x5e   : > { %299 = vadd.xlane.f32.xlu0 %v298_v2  ;;  %545 = vmatprep.subr.bf16.mxu0 %v782_v9  ;;  %s415_s14 = sshll.u32 %s286_s27, 4  ;;  %s401_s24 = scalar_lea.sflag [#allocation5], %s964_s8  ;;  %s995_s14 = int_to_ptr.vmem [resolvable:$true] %s415_s14 }
  0x5f   : > { %s690_s21 = scalar_lea.vmem %s995_s14, 128  ;;  %s784_s26 = smov [#allocation8]  }
  0x60   : > { %p691_p13 = scmp.ne.s32.totalorder %s995_s14, %s690_s21  ;;  %s694_s28 = sshll.u32 %s784_s26, 4  ;;  %s695_s28 = int_to_ptr.vmem [resolvable:$false] %s694_s28 }
  0x61   : > { %546 = vmatpush3.bf16.msra.mxu0 %v629_v10  ;;  %s696_s30 = scalar_lea.vmem %s695_s28, 256  ;;  %p697_p12 = scmp.lt.s32.totalorder %s995_s14, %s695_s28 }
  0x62   : > { %p692_p6 = pnand %p691_p13, %p911_p10  ;;  %p698_p11 = scmp.lt.s32.totalorder %s696_s30, %s690_s21 }
  0x64   : > { %p693_p8 = pneg %p692_p6  ;;  %p699_p0 = por %p698_p11, %p697_p12 }
  0x66   : > { %p700_p5 = pnand %p699_p0, %p693_p8 }
  0xeb   : > { %v300_v3 = vpop.xlane.xlu0 %299 }
  0xec   : > { %v302_v4 = vmul.f32 0.03125, %v300_v3 }
  0xee   : > { %v303_v5 = vsub.f32 %v296_v1, %v302_v4 }
  0xf0   : > { %v304_v6 = vmul.f32 %v303_v5, %v303_v5 }
  0xf2   : > { %v305_v7 = vsel %vm297_vm0, %v304_v6, 0.0 }
  0xf3   : > { %306 = vadd.xlane.f32.xlu0 %v305_v7 }
 0x180   : > { %v307_v11 = vpop.xlane.xlu0 %306 }
 0x181   : > { %v308_v12 = vmul.f32 0.03125, %v307_v11 }
 0x183   : > { %v309_v13 = vadd.f32 1e-05, %v308_v12 }
 0x185   : > { %630 = vrsqrt.f32 %v309_v13 }
 0x18f   : > { %v631_v14 = vpop.eup %630 }
 0x190   : > { %v311_v16 = vmul.f32 %v631_v14, %v303_v5 }
 0x192   : > { %v319_v18 = vmul.f32 %v530_v15, %v311_v16 }
 0x194   : > { %v327_v19 = vadd.f32 %v531_v17, %v319_v18 }
 0x196   : > { %v328_v20 = vpack.c.bf16 %v327_v19, %v327_v19 }
 0x198   : > { %330 = vst.msk [vmem:[#allocation2] sm:$0xf] %vm329_vm2, %v328_v20 }
 0x19f   : > { %v331_v21 = vld [vmem:[#allocation2] sm:$0xf] }
 0x1a0   : > { %548 = vmatmul.mubr.msk.bf16.vlgmr.msra.gmra.mrb[0].mxu0 %vm297_vm0, %v331_v21 }
 0x273   : > { %v393_v23 = vpop.f32.mrb[0].mxu0 }
 0x274   : > { %v394_v24 = vadd.f32 %v532_v22, %v393_v23  ;;  %v549_v25 = vpop.f32.mrb[1].mxu0 }
 0x275   : > { %v396_v26 = vpop.f32.mrb[2].mxu0 }
 0x276   : > { %399 = vst [vmem:[%s286_s27] sm:$0xff] %v394_v24  ;;  %v550_v27 = vpop.f32.mrb[3].mxu0 }
 0x277   : > { %703 = shalt.err (!%p700_p5)
}
 0x278   : > { %s704_s8 = scalar_lea.hbm %s993_s12, 128  ;;  %s708_s10 = scalar_lea.hbm %s1047_s5, 256 }
 0x279   : > { %p705_p9 = scmp.ne.s32.totalorder %s993_s12, %s704_s8  ;;  %p709_p7 = scmp.lt.u32.totalorder %s993_s12, %s1047_s5 }
 0x27a   : > { %p710_p3 = scmp.lt.u32.totalorder %s708_s10, %s704_s8  ;;  %p712_p13 = scmp.lt.u32.totalorder %s704_s8, %s993_s12 }
 0x27b   : > { %p706_p1 = pnand %p705_p9, %p911_p10 }
 0x27c   : > { %p711_p4 = por %p710_p3, %p709_p7 }
 0x27d   : > { %p707_p2 = pneg %p706_p1 }
 0x27e   : > { %p713_p6 = por %p712_p13, %p711_p4 }
 0x280   : > { %p714_p8 = pnand %p713_p6, %p707_p2 }
 0x282   : > { %717 = shalt.err (!%p714_p8)
}
 0x283   : > { %557 = dma.vmem_to_hbm [thread:$0]  (%p911_p10), %s995_s14, 128, %s993_s12, %s401_s24  }
 0x284 PF: > { %s427_s27 = sand.u32 1, %s756_s18   ;;  %p1065_p12 = scmp.ne.s32.totalorder %s1055_s29, 0 }
 0x285   : > { %p1066_p11 = scmp.ge.s32.totalorder %s776_s23, 2  ;;  %s428_s16 = scalar_lea.sflag [#allocation5], %s427_s27 }
 0x287   : > { %p568_p0 = pnand %p1066_p11, %p1065_p12 }
 0x289   : > { %751 = dma.done.wait (!%p568_p0), %s428_s16, 128  }
 0x28a   : > { %753 = vsyncadd (!%p568_p0), %s428_s16, 4294967168  ;;  %s22_s23 = sadd.s32 1, %s776_s23   ;;  %s1067_s18 = smov %s760_s19 }
 0x28b   : > { %p19_p5 = scmp.ge.s32.totalorder %s22_s23, 4   ;;  %s1068_s19 = smov %s764_s20 }
 0x28c   : > { %s1069_s20 = smov %s920_s15  ;;  %s1070_s21 = smov %s772_s22 }
 0x28d   : > { %s1071_s22 = smov %s1073_s9  ;;  %21 = sbr.rel (!%p19_p5) target bundleno = 7 (0x7), region = 97 }
 0x294   :  { %433 = vsyncpa [#allocation4], 1 }
 0x295   :  { %435 = vsyncpa [#allocation4 + $0x1], 1 }
 0x296   :  { %436 = vsyncpa [#allocation7], 1 }
 0x297   :  { %437 = vsyncpa [#allocation5], 1 }
 0x298   :  { %439 = vsyncpa [#allocation5 + $0x1], 1 }

</bundles_post_ra>
